<compile_context>
chip_gen: v5e
topology: v5e:2x2
jax: 0.10.0
libtpu: 0.0.40
codegen_flags: <defaults>
</compile_context>

<pallas_src>
import jax
import jax.numpy as jnp
from jax.experimental import pallas as pl
from jax.experimental.pallas import tpu as pltpu

EXPANSION = 4
EPS = 1e-5
LANE = 128
ROW_TILE_TARGET = 1024                      # rows per grid step for HBM-bound passes
VMEM_LIMIT = 64 * 1024 * 1024               # v5e/v6e: 128 MiB physical; v7x: keep usage low


# ----------------------------------------------------------------------------- helpers
def _rup(n, m):
    return ((n + m - 1) // m) * m


def _row_tile(m, target=ROW_TILE_TARGET):
    """Largest divisor of m that is a multiple of 8 and <= target."""
    t = min(target, m)
    while t >= 8:
        if m % t == 0 and t % 8 == 0:
            return t
        t -= 1
    # TODO(synk): awkward M (not a multiple of 8) falls back to one full-M block;
    # production shapes should pad M + mask the stats rows instead.
    return m


def _pad2(w, rows, cols):
    w = w.astype(jnp.float32)
    return jnp.pad(w, ((0, rows - w.shape[0]), (0, cols - w.shape[1])))


def _padc(v, cols):
    v = v.reshape(1, -1).astype(jnp.float32)
    return jnp.pad(v, ((0, 0), (0, cols - v.shape[1])))


def _compiler_params():
    return pltpu.CompilerParams(dimension_semantics=("parallel",),
                                vmem_limit_bytes=VMEM_LIMIT)


def _bn_affine(stats, gamma, beta, count):
    """Fold training-mode BN into y*a + b from per-tile (sum, sumsq) partials."""
    s = jnp.sum(stats[:, 0, :], axis=0)
    ss = jnp.sum(stats[:, 1, :], axis=0)
    mean = s / count
    var = jnp.maximum(ss / count - mean * mean, 0.0)    # clamp tiny negatives
    a = gamma.reshape(-1) * jax.lax.rsqrt(var + EPS)
    b = beta.reshape(-1) - mean * a
    return a.reshape(1, -1), b.reshape(1, -1)


# --------------------------------------------------------- 1x1 conv (matmul) + BN stats
def _make_mm_kernel(apply_affine, use_relu):
    def kernel(*refs):
        if apply_affine:
            x_ref, a_ref, b_ref, w_ref, y_ref, st_ref = refs
        else:
            x_ref, w_ref, y_ref, st_ref = refs
        x = x_ref[...]
        if apply_affine:                       # fused BN affine of the previous layer
            x = x * a_ref[...] + b_ref[...]
        if use_relu:
            x = jnp.maximum(x, 0.0)
        y = jnp.dot(x, w_ref[...], preferred_element_type=jnp.float32)
        y_ref[...] = y
        st_ref[0] = jnp.concatenate(
            [jnp.sum(y, axis=0, keepdims=True),
             jnp.sum(y * y, axis=0, keepdims=True)], axis=0)
    return kernel


def _mm_stats_pass(x, w, affine=None, relu=False):
    """y = [relu](x*a + b)] @ w  plus per-tile BN partial sums.  Row-tiled 1-D grid."""
    M, K = x.shape
    Cout = w.shape[1]
    target = ROW_TILE_TARGET if Cout <= 1024 else ROW_TILE_TARGET // 2   # v7x VMEM fit
    tm = _row_tile(M, target)
    gm = M // tm

    in_specs = [pl.BlockSpec((tm, K), lambda i: (i, 0))]
    inputs = [x]
    if affine is not None:
        a, b = affine
        in_specs += [pl.BlockSpec((1, K), lambda i: (0, 0)),
                     pl.BlockSpec((1, K), lambda i: (0, 0))]
        inputs += [a, b]
    in_specs += [pl.BlockSpec((K, Cout), lambda i: (0, 0))]
    inputs += [w]

    y, st = pl.pallas_call(
        _make_mm_kernel(affine is not None, relu),
        grid=(gm,),
        in_specs=in_specs,
        out_specs=[pl.BlockSpec((tm, Cout), lambda i: (i, 0)),
                   pl.BlockSpec((1, 2, Cout), lambda i: (i, 0, 0))],
        out_shape=[jax.ShapeDtypeStruct((M, Cout), jnp.float32),
                   jax.ShapeDtypeStruct((gm, 2, Cout), jnp.float32)],
        compiler_params=_compiler_params(),
    )(*inputs)
    return y, st


# ----------------------------------------- fused conv3 + downsample 1x1 (stride != 1)
def _dual_mm_kernel(y2_ref, a_ref, b_ref, w3_ref, xs_ref, wd_ref,
                    y3_ref, st3_ref, id_ref, std_ref):
    # BN2 affine + ReLU + conv3
    x = jnp.maximum(y2_ref[...] * a_ref[...] + b_ref[...], 0.0)
    y3 = jnp.dot(x, w3_ref[...], preferred_element_type=jnp.float32)
    y3_ref[...] = y3
    st3_ref[0] = jnp.concatenate(
        [jnp.sum(y3, axis=0, keepdims=True),
         jnp.sum(y3 * y3, axis=0, keepdims=True)], axis=0)
    # downsample 1x1 conv on the strided input (same row tiling -> shared pipeline)
    ident = jnp.dot(xs_ref[...], wd_ref[...], preferred_element_type=jnp.float32)
    id_ref[...] = ident
    std_ref[0] = jnp.concatenate(
        [jnp.sum(ident, axis=0, keepdims=True),
         jnp.sum(ident * ident, axis=0, keepdims=True)], axis=0)


def _dual_mm_stats_pass(y2, a2, b2, w3, xs, wd):
    M, Cp = y2.shape
    Cinp = xs.shape[1]
    C4p = w3.shape[1]
    target = ROW_TILE_TARGET if C4p <= 1024 else ROW_TILE_TARGET // 2
    tm = _row_tile(M, target)
    gm = M // tm
    return pl.pallas_call(
        _dual_mm_kernel,
        grid=(gm,),
        in_specs=[pl.BlockSpec((tm, Cp), lambda i: (i, 0)),
                  pl.BlockSpec((1, Cp), lambda i: (0, 0)),
                  pl.BlockSpec((1, Cp), lambda i: (0, 0)),
                  pl.BlockSpec((Cp, C4p), lambda i: (0, 0)),
                  pl.BlockSpec((tm, Cinp), lambda i: (i, 0)),
                  pl.BlockSpec((Cinp, C4p), lambda i: (0, 0))],
        out_specs=[pl.BlockSpec((tm, C4p), lambda i: (i, 0)),
                   pl.BlockSpec((1, 2, C4p), lambda i: (i, 0, 0)),
                   pl.BlockSpec((tm, C4p), lambda i: (i, 0)),
                   pl.BlockSpec((1, 2, C4p), lambda i: (i, 0, 0))],
        out_shape=[jax.ShapeDtypeStruct((M, C4p), jnp.float32),
                   jax.ShapeDtypeStruct((gm, 2, C4p), jnp.float32),
                   jax.ShapeDtypeStruct((M, C4p), jnp.float32),
                   jax.ShapeDtypeStruct((gm, 2, C4p), jnp.float32)],
        compiler_params=_compiler_params(),
    )(y2, a2, b2, w3, xs, wd)


# --------------------------------------------- 3x3 conv (pad 1) fused with BN1 + ReLU
def _make_conv2_kernel(H, W, Cp):
    def kernel(y1_ref, a_ref, b_ref, w2_ref, y2_ref, st_ref, pad_ref):
        # BN1 affine + ReLU fused here (a/b computed from full-batch stats).
        y1 = jnp.maximum(y1_ref[0] * a_ref[...] + b_ref[...], 0.0)      # (H, W, Cp)

        # Zero halo: interior written once, only the 4 border stripes zeroed.
        zr = jnp.zeros((1, W + 2, Cp), jnp.float32)
        zc = jnp.zeros((H, 1, Cp), jnp.float32)
        pad_ref[0:1, :, :] = zr
        pad_ref[H + 1:H + 2, :, :] = zr
        pad_ref[1:H + 1, 0:1, :] = zc
        pad_ref[1:H + 1, W + 1:W + 2, :] = zc
        pad_ref[1:H + 1, 1:W + 1, :] = y1

        # 3x3 conv as 9 accumulating K=Cp matmuls (no im2col concat / 9x activation).
        acc = jnp.zeros((H * W, Cp), jnp.float32)
        for di in range(3):
            for dj in range(3):
                patch = pad_ref[di:di + H, dj:dj + W, :].reshape(H * W, Cp)
                acc = acc + jnp.dot(patch, w2_ref[di * 3 + dj],
                                    preferred_element_type=jnp.float32)

        y2_ref[0] = acc
        st_ref[0] = jnp.concatenate(
            [jnp.sum(acc, axis=0, keepdims=True),
             jnp.sum(acc * acc, axis=0, keepdims=True)], axis=0)
    return kernel


def _conv2_pass(y1_img, a1, b1, w2p):
    N, H, W, Cp = y1_img.shape
    y2, st = pl.pallas_call(
        _make_conv2_kernel(H, W, Cp),
        grid=(N,),
        in_specs=[pl.BlockSpec((1, H, W, Cp), lambda n: (n, 0, 0, 0)),
                  pl.BlockSpec((1, Cp), lambda n: (0, 0)),
                  pl.BlockSpec((1, Cp), lambda n: (0, 0)),
                  pl.BlockSpec((9, Cp, Cp), lambda n: (0, 0, 0))],
        out_specs=[pl.BlockSpec((1, H * W, Cp), lambda n: (n, 0, 0)),
                   pl.BlockSpec((1, 2, Cp), lambda n: (n, 0, 0))],
        out_shape=[jax.ShapeDtypeStruct((N, H * W, Cp), jnp.float32),
                   jax.ShapeDtypeStruct((N, 2, Cp), jnp.float32)],
        scratch_shapes=[pltpu.VMEM((H + 2, W + 2, Cp), jnp.float32)],
        compiler_params=_compiler_params(),
    )(y1_img, a1, b1, w2p)
    return y2, st


# ------------------------------------------------------ stats-only pass (stride != 1)
def _stats_kernel(y_ref, st_ref):
    y = y_ref[...]
    st_ref[0] = jnp.concatenate(
        [jnp.sum(y, axis=0, keepdims=True),
         jnp.sum(y * y, axis=0, keepdims=True)], axis=0)


def _stats_pass(y):
    M, C = y.shape
    tm = _row_tile(M)
    gm = M // tm
    return pl.pallas_call(
        _stats_kernel,
        grid=(gm,),
        in_specs=[pl.BlockSpec((tm, C), lambda i: (i, 0))],
        out_specs=pl.BlockSpec((1, 2, C), lambda i: (i, 0, 0)),
        out_shape=jax.ShapeDtypeStruct((gm, 2, C), jnp.float32),
        compiler_params=_compiler_params(),
    )(y)


# ---------------------------------------------- BN3 affine + residual add + final ReLU
def _make_final_kernel(c_out):
    def kernel(y3_ref, a3_ref, b3_ref, id_ref, ai_ref, bi_ref, o_ref):
        y3 = y3_ref[...] * a3_ref[...] + b3_ref[...]
        ident = id_ref[...] * ai_ref[...] + bi_ref[...]
        # write the un-padded c_out columns directly (no wrapper slice pass)
        o_ref[...] = jnp.maximum(y3 + ident, 0.0)[:, :c_out]
    return kernel


def _final_pass(y3, a3, b3, ident, aid, bid, c_out):
    M, C = y3.shape
    target = ROW_TILE_TARGET if C <= 1024 else ROW_TILE_TARGET // 2
    tm = _row_tile(M, target)
    gm = M // tm
    row = pl.BlockSpec((tm, C), lambda i: (i, 0))
    vec = pl.BlockSpec((1, C), lambda i: (0, 0))
    return pl.pallas_call(
        _make_final_kernel(c_out),
        grid=(gm,),
        in_specs=[row, vec, vec, row, vec, vec],
        out_specs=pl.BlockSpec((tm, c_out), lambda i: (i, 0)),
        out_shape=jax.ShapeDtypeStruct((M, c_out), jnp.float32),
        compiler_params=_compiler_params(),
    )(y3, a3, b3, ident, aid, bid)


# ------------------------------------------------------------------------ full forward
def bottleneck_forward(x_nchw, params, stride=1):
    """Fused Bottleneck forward.  x_nchw: (N, Cin, H, W) float32 (NCHW like PyTorch)."""
    x = jnp.transpose(x_nchw, (0, 2, 3, 1)).astype(jnp.float32)     # NCHW -> NHWC
    N, H, W, Cin = x.shape
    C = params["w1"].shape[1]
    C4 = C * EXPANSION
    if stride == 1 and Cin != C4:
        raise ValueError("stride=1 Bottleneck needs in_channels == channels*expansion "
                         f"for the residual add (got {Cin} vs {C4}).")

    Cinp, Cp, C4p = _rup(Cin, LANE), _rup(C, LANE), _rup(C4, LANE)

    # lane-dense zero-padded f32 parameters
    w1p = _pad2(params["w1"], Cinp, Cp)
    w3p = _pad2(params["w3"], Cp, C4p)
    w2p = jnp.pad(params["w2"].astype(jnp.float32),
                  ((0, 0), (0, 0), (0, Cp - C), (0, Cp - C))).reshape(9, Cp, Cp)
    g1, be1 = _padc(params["g1"], Cp), _padc(params["b1"], Cp)
    g2, be2 = _padc(params["g2"], Cp), _padc(params["b2"], Cp)
    g3, be3 = _padc(params["g3"], C4p), _padc(params["b3"], C4p)

    xp = jnp.pad(x, ((0, 0), (0, 0), (0, 0), (0, Cinp - Cin)))
    M = N * H * W
    x_flat = xp.reshape(M, Cinp)

    # ---- conv1 (1x1) + BN1 batch statistics -------------------------------------
    y1, st1 = _mm_stats_pass(x_flat, w1p)
    a1, b1 = _bn_affine(st1, g1, be1, M)

    # ---- BN1 affine + ReLU + conv2 (3x3, pad 1) + BN2 statistics -----------------
    y2_full, st2 = _conv2_pass(y1.reshape(N, H, W, Cp), a1, b1, w2p)

    if stride == 1:
        Ho, Wo, Mo = H, W, M
        y2 = y2_full.reshape(Mo, Cp)
        a2, b2 = _bn_affine(st2, g2, be2, Mo)

        # ---- BN2 affine + ReLU + conv3 (1x1) + BN3 statistics --------------------
        y3, st3 = _mm_stats_pass(y2, w3p, affine=(a2, b2), relu=True)
        a3, b3 = _bn_affine(st3, g3, be3, Mo)

        ident = x_flat                                  # Cinp == C4p since Cin == C4
        aid = jnp.ones((1, C4p), jnp.float32)
        bid = jnp.zeros((1, C4p), jnp.float32)
    else:
        # spatial stride as wrapper-side layout plumbing; BN2 stats over kept positions.
        Ho = (H - 1) // stride + 1
        Wo = (W - 1) // stride + 1
        Mo = N * Ho * Wo
        y2 = y2_full.reshape(N, H, W, Cp)[:, ::stride, ::stride, :].reshape(Mo, Cp)
        a2, b2 = _bn_affine(_stats_pass(y2), g2, be2, Mo)

        # ---- fused (BN2 affine+ReLU+conv3) + downsample 1x1, one pallas_call -----
        wdp = _pad2(params["wd"], Cinp, C4p)
        gd, bed = _padc(params["gd"], C4p), _padc(params["bd"], C4p)
        xs = xp[:, ::stride, ::stride, :].reshape(Mo, Cinp)
        y3, st3, ident, st_d = _dual_mm_stats_pass(y2, a2, b2, w3p, xs, wdp)
        a3, b3 = _bn_affine(st3, g3, be3, Mo)
        aid, bid = _bn_affine(st_d, gd, bed, Mo)

    # ---- BN3 affine + residual add + ReLU; emits un-padded C4 columns -------------
    out = _final_pass(y3, a3, b3, ident, aid, bid, C4)   # (Mo, C4) f32
    out = out.reshape(N, Ho, Wo, C4)
    return jnp.transpose(out, (0, 3, 1, 2))              # NHWC -> NCHW


# ------------------------------------------------------------------- params & reference
def init_params(key, in_channels, channels, stride=1):
    C4 = channels * EXPANSION
    ks = jax.random.split(key, 16)
    p = {
        "w1": 0.1 * jax.random.normal(ks[0], (in_channels, channels), jnp.float32),
        "g1": 1.0 + 0.1 * jax.random.normal(ks[1], (1, channels), jnp.float32),
        "b1": 0.1 * jax.random.normal(ks[2], (1, channels), jnp.float32),
        "w2": 0.1 * jax.random.normal(ks[3], (3, 3, channels, channels), jnp.float32),
        "g2": 1.0 + 0.1 * jax.random.normal(ks[4], (1, channels), jnp.float32),
        "b2": 0.1 * jax.random.normal(ks[5], (1, channels), jnp.float32),
        "w3": 0.1 * jax.random.normal(ks[6], (channels, C4), jnp.float32),
        "g3": 1.0 + 0.1 * jax.random.normal(ks[7], (1, C4), jnp.float32),
        "b3": 0.1 * jax.random.normal(ks[8], (1, C4), jnp.float32),
    }
    if stride != 1:
        p["wd"] = 0.1 * jax.random.normal(ks[9], (in_channels, C4), jnp.float32)
        p["gd"] = 1.0 + 0.1 * jax.random.normal(ks[10], (1, C4), jnp.float32)
        p["bd"] = 0.1 * jax.random.normal(ks[11], (1, C4), jnp.float32)
    return p


def ref_bottleneck(x_nchw, params, stride=1):
    """Pure-JAX f32 reference (lax convs + training-mode BN)."""
    x = jnp.transpose(x_nchw, (0, 2, 3, 1)).astype(jnp.float32)
    dn = ("NHWC", "HWIO", "NHWC")

    def bn(y, g, b):
        mean = jnp.mean(y, axis=(0, 1, 2), keepdims=True)
        var = jnp.mean(jnp.square(y - mean), axis=(0, 1, 2), keepdims=True)
        return ((y - mean) * jax.lax.rsqrt(var + EPS)
                * g.reshape(1, 1, 1, -1) + b.reshape(1, 1, 1, -1))

    w1 = params["w1"].reshape(1, 1, *params["w1"].shape)
    y = jax.lax.conv_general_dilated(x, w1, (1, 1), "VALID", dimension_numbers=dn)
    y = jax.nn.relu(bn(y, params["g1"], params["b1"]))
    y = jax.lax.conv_general_dilated(y, params["w2"], (stride, stride),
                                     [(1, 1), (1, 1)], dimension_numbers=dn)
    y = jax.nn.relu(bn(y, params["g2"], params["b2"]))
    w3 = params["w3"].reshape(1, 1, *params["w3"].shape)
    y = bn(jax.lax.conv_general_dilated(y, w3, (1, 1), "VALID",
                                        dimension_numbers=dn),
           params["g3"], params["b3"])
    if stride != 1:
        wd = params["wd"].reshape(1, 1, *params["wd"].shape)
        idt = jax.lax.conv_general_dilated(x, wd, (stride, stride), "VALID",
                                           dimension_numbers=dn)
        idt = bn(idt, params["gd"], params["bd"])
    else:
        idt = x
    out = jax.nn.relu(y + idt)
    return jnp.transpose(out, (0, 3, 1, 2))


if __name__ == "__main__":
    key = jax.random.PRNGKey(0)

    def _run(stride):
        N, channels = 2, 4
        Cin = channels * EXPANSION          # 16; required for stride=1 residual add
        H = W = 16
        kx, kp = jax.random.split(jax.random.fold_in(key, stride))
        x = jax.random.normal(kx, (N, Cin, H, W), jnp.float32)      # NCHW like PyTorch
        params = init_params(kp, Cin, channels, stride)

        out = jax.block_until_ready(bottleneck_forward(x, params, stride=stride))
        ref = jax.block_until_ready(ref_bottleneck(x, params, stride=stride))
        assert out.shape == ref.shape, (out.shape, ref.shape)
        ok = jnp.allclose(out, ref, atol=2e-2, rtol=2e-2)
        assert bool(ok), f"stride={stride} max|err|={float(jnp.max(jnp.abs(out - ref)))}"

    _run(1)   # identity residual path
    _run(2)   # strided conv2 + fused conv3/downsample branch
    print("KERNEL_OK")
</pallas_src>

<mosaic_0001>
module attributes {stable_mosaic.version = 11 : i64} {
  func.func @kernel(%arg0: i32, %arg1: memref<512x128xf32, #tpu.memory_space<vmem>>, %arg2: memref<128x128xf32, #tpu.memory_space<vmem>>, %arg3: memref<512x128xf32, #tpu.memory_space<vmem>>, %arg4: memref<1x2x128xf32, #tpu.memory_space<vmem>>) attributes {dimension_semantics = [#tpu.dimension_semantics<parallel>], iteration_bounds = array<i64: 1>, scalar_prefetch = 0 : i64, scratch_operands = 0 : i64, tpu.core_type = #tpu.core_type<tc>, window_params = [{transform_indices = @transform_0, window_bounds = array<i64: 512, 128>}, {pipeline_mode = #tpu.pipeline_mode<synchronous>, transform_indices = @transform_1, window_bounds = array<i64: 128, 128>}, {transform_indices = @transform_2, window_bounds = array<i64: 512, 128>}, {transform_indices = @transform_3, window_bounds = array<i64: 1, 2, 128>}]} {
    %c0 = arith.constant 0 : index
    %c0_0 = arith.constant 0 : index
    %0 = vector.load %arg1[%c0, %c0_0] : memref<512x128xf32, #tpu.memory_space<vmem>>, vector<512x128xf32>
    %c0_1 = arith.constant 0 : index
    %c0_2 = arith.constant 0 : index
    %1 = vector.load %arg2[%c0_1, %c0_2] : memref<128x128xf32, #tpu.memory_space<vmem>>, vector<128x128xf32>
    %cst = arith.constant dense<0.000000e+00> : vector<512x128xf32>
    %2 = tpu.matmul %0, %1, %cst {dimension_numbers = #tpu.dot_dimension_numbers<[1], [0], [0], [1], [0, 0, 1, 1], [], []>} : vector<512x128xf32>, vector<128x128xf32>, vector<512x128xf32> -> vector<512x128xf32>
    %c0_3 = arith.constant 0 : index
    %c0_4 = arith.constant 0 : index
    %3 = vector.load %arg3[%c0_3, %c0_4] : memref<512x128xf32, #tpu.memory_space<vmem>>, vector<512x128xf32>
    tpu.vector_store %arg3[%c0_3, %c0_4], %2 {strides = array<i32>} : memref<512x128xf32, #tpu.memory_space<vmem>>, vector<512x128xf32>,
    %cst_5 = arith.constant dense<0.000000e+00> : vector<128xf32>
    %4 = vector.multi_reduction <add>, %2, %cst_5 [0] : vector<512x128xf32> to vector<128xf32>
    %5 = vector.shape_cast %4 : vector<128xf32> to vector<1x128xf32>
    %6 = arith.mulf %2, %2 : vector<512x128xf32>
    %cst_6 = arith.constant dense<0.000000e+00> : vector<128xf32>
    %7 = vector.multi_reduction <add>, %6, %cst_6 [0] : vector<512x128xf32> to vector<128xf32>
    %8 = vector.shape_cast %7 : vector<128xf32> to vector<1x128xf32>
    %9 = tpu.concatenate %5, %8 in 0 : vector<1x128xf32>, vector<1x128xf32> -> vector<2x128xf32>
    %c0_7 = arith.constant 0 : index
    %c0_8 = arith.constant 0 : index
    %c0_9 = arith.constant 0 : index
    %10 = vector.load %arg4[%c0_7, %c0_8, %c0_9] : memref<1x2x128xf32, #tpu.memory_space<vmem>>, vector<1x2x128xf32>
    %11 = vector.shape_cast %10 : vector<1x2x128xf32> to vector<2x128xf32>
    %12 = vector.shape_cast %9 : vector<2x128xf32> to vector<1x2x128xf32>
    tpu.vector_store %arg4[%c0_7, %c0_8, %c0_9], %12 {strides = array<i32>} : memref<1x2x128xf32, #tpu.memory_space<vmem>>, vector<1x2x128xf32>,
    return
  }
  func.func @transform_0(%arg0: i32) -> (i32, i32) {
    %c0_i32 = arith.constant 0 : i32
    %c0_i32_0 = arith.constant 0 : i32
    return %arg0, %c0_i32 : i32, i32
  }
  func.func @transform_1(%arg0: i32) -> (i32, i32) {
    %c0_i32 = arith.constant 0 : i32
    %c0_i32_0 = arith.constant 0 : i32
    %c0_i32_1 = arith.constant 0 : i32
    return %c0_i32, %c0_i32_0 : i32, i32
  }
  func.func @transform_2(%arg0: i32) -> (i32, i32) {
    %c0_i32 = arith.constant 0 : i32
    %c0_i32_0 = arith.constant 0 : i32
    return %arg0, %c0_i32 : i32, i32
  }
  func.func @transform_3(%arg0: i32) -> (i32, i32, i32) {
    %c0_i32 = arith.constant 0 : i32
    %c0_i32_0 = arith.constant 0 : i32
    %c0_i32_1 = arith.constant 0 : i32
    return %arg0, %c0_i32, %c0_i32_0 : i32, i32, i32
  }
}

</mosaic_0001>

<bundles_post_ra>
// kernel: tpu_custom_call.1
= control target key start
LH: loop header
LB: loop body
LE: loop exit
PB: predicated region body
PF: predicated region fallthrough
CT: control target
= control target key end

     0   :  { %9 = vsyncpa [#allocation3], 0  ;;  %s1134_s0 = inlined_call_operand.hbm [shape: f32[512,128], index: 0, kind: input, shape index: {}]   ;;  %s1135_s1 = inlined_call_operand.hbm [shape: f32[128,128], index: 1, kind: input, shape index: {}]   ;;  %s1136_s2 = inlined_call_operand.hbm [shape: f32[512,128], index: 2, kind: output, shape index: {0}]   ;;  %s1137_s3 = inlined_call_operand.hbm [shape: f32[1,2,128], index: 3, kind: output, shape index: {1}]  }
   0x1   :  { %10 = vsyncpa [#allocation6], 0 }
   0x2   :  { %11 = vsyncpa [#allocation4], 0 }
   0x3   :  { %12 = vsyncpa [#allocation9], 0  ;;  %s17_s14 = sshll.u32 %s1134_s0, 4  ;;  %s799_s15 = smov [#allocation2]   ;;  %s18_s14 = int_to_ptr.hbm [resolvable:$true] %s17_s14 }
   0x4   :  { %s19_s16 = sshll.u32 %s799_s15, 4  ;;  %s30_s19 = sshll.u32 %s1135_s1, 4  ;;  %s20_s16 = int_to_ptr.vmem [resolvable:$true] %s19_s16  ;;  %s31_s19 = int_to_ptr.hbm [resolvable:$true] %s30_s19 }
   0x5   :  { %s800_s20 = smov 128   ;;  %s801_s21 = smov 8  }
   0x6   :  { %25 = dma.hbm_to_vmem [thread:$0]  %s18_s14, 8192, %s20_s16, [#allocation3], %s800_s20, %s800_s20, %s801_s21  }
   0x7   :  { %s802_s22 = smov [#allocation5]  }
   0x8   :  { %s32_s23 = sshll.u32 %s802_s22, 4  ;;  %s33_s23 = int_to_ptr.vmem [resolvable:$true] %s32_s23 }
   0x9   :  { %38 = dma.hbm_to_vmem [thread:$0]  %s31_s19, 2048, %s33_s23, [#allocation6], %s800_s20, %s800_s20, %s801_s21  }
   0xa   :  { %791 = dma.done.wait [#allocation3], 8192  }
   0xb   :  { %792 = vsyncadd [#allocation3], 4294959104 }
   0xc   :  { %793 = dma.done.wait [#allocation6], 2048  }
   0xd   :  { %794 = vsyncadd [#allocation6], 4294965248  ;;  %v126_v0 = vld [vmem:[#allocation5 + $0x78] sm:$0xff]  ;;  %v125_v1 = vld [vmem:[#allocation5 + $0x70] sm:$0xff]  ;;  %s803_s0 = smov [#allocation7]   ;;  %s611_s26 = sshll.u32 %s1136_s2, 4  ;;  %s612_s26 = int_to_ptr.hbm [resolvable:$true] %s611_s26 }
   0xe   :  { %127 = vmatpush.msra.mxu0 %v126_v0  ;;  %641 = vmatpush.msra.mxu1 %v126_v0  ;;  %v124_v2 = vld [vmem:[#allocation5 + $0x68] sm:$0xff]  ;;  %v123_v3 = vld [vmem:[#allocation5 + $0x60] sm:$0xff]  ;;  %v122_v4 = vld [vmem:[#allocation5 + $0x58] sm:$0xff]  ;;  %s609_s1 = sshll.u32 %s803_s0, 4  ;;  %s804_s2 = smov [#allocation8]   ;;  %vm602_vm0 = vcmask 1040384   ;;  %s610_s1 = int_to_ptr.vmem [resolvable:$true] %s609_s1 }
   0xf   :  { %642 = vmatpush.msra.mxu2 %v126_v0  ;;  %643 = vmatpush.msra.mxu3 %v126_v0  ;;  %v121_v5 = vld [vmem:[#allocation5 + $0x50] sm:$0xff]  ;;  %v120_v6 = vld [vmem:[#allocation5 + $0x48] sm:$0xff]  ;;  %v119_v7 = vld [vmem:[#allocation5 + $0x40] sm:$0xff]  ;;  %s623_s27 = sshll.u32 %s804_s2, 4  ;;  %s625_s30 = sshll.u32 %s1137_s3, 4  ;;  %s624_s27 = int_to_ptr.vmem [resolvable:$true] %s623_s27  ;;  %s626_s30 = int_to_ptr.hbm [resolvable:$true] %s625_s30 }
  0x10   :  { %128 = vmatpush.msra.mxu0 %v125_v1  ;;  %644 = vmatpush.msra.mxu1 %v125_v1  ;;  %v118_v8 = vld [vmem:[#allocation5 + $0x38] sm:$0xff]  ;;  %v117_v9 = vld [vmem:[#allocation5 + $0x30] sm:$0xff]  ;;  %v116_v10 = vld [vmem:[#allocation5 + $0x28] sm:$0xff] }
  0x11   :  { %645 = vmatpush.msra.mxu2 %v125_v1  ;;  %646 = vmatpush.msra.mxu3 %v125_v1  ;;  %v115_v11 = vld [vmem:[#allocation5 + $0x20] sm:$0xff]  ;;  %v114_v12 = vld [vmem:[#allocation5 + $0x18] sm:$0xff]  ;;  %v113_v13 = vld [vmem:[#allocation5 + $0x10] sm:$0xff] }
  0x12   :  { %129 = vmatpush.msra.mxu0 %v124_v2  ;;  %647 = vmatpush.msra.mxu1 %v124_v2  ;;  %v112_v14 = vld [vmem:[#allocation5 + $0x8] sm:$0xff]  ;;  %v111_v15 = vld [vmem:[#allocation5] sm:$0xff]  ;;  %v49_v20 = vld [vmem:[#allocation2 + $0x10] sm:$0xff] }
  0x13   :  { %648 = vmatpush.msra.mxu2 %v124_v2  ;;  %649 = vmatpush.msra.mxu3 %v124_v2  ;;  %v47_v16 = vld [vmem:[#allocation2] sm:$0xff]  ;;  %v48_v18 = vld [vmem:[#allocation2 + $0x8] sm:$0xff]  ;;  %v65_v21 = vld [vmem:[#allocation2 + $0x90] sm:$0xff] }
  0x14   :  { %130 = vmatpush.msra.mxu0 %v123_v3  ;;  %650 = vmatpush.msra.mxu1 %v123_v3  ;;  %v63_v17 = vld [vmem:[#allocation2 + $0x80] sm:$0xff]  ;;  %v64_v19 = vld [vmem:[#allocation2 + $0x88] sm:$0xff]  ;;  %v50_v22 = vld [vmem:[#allocation2 + $0x18] sm:$0xff] }
  0x15   :  { %651 = vmatpush.msra.mxu2 %v123_v3  ;;  %652 = vmatpush.msra.mxu3 %v123_v3  ;;  %v66_v23 = vld [vmem:[#allocation2 + $0x98] sm:$0xff]  ;;  %v79_v24 = vld [vmem:[#allocation2 + $0x100] sm:$0xff]  ;;  %v80_v27 = vld [vmem:[#allocation2 + $0x108] sm:$0xff] }
  0x16   :  { %131 = vmatpush.msra.mxu0 %v122_v4  ;;  %653 = vmatpush.msra.mxu1 %v122_v4  ;;  %v51_v25 = vld [vmem:[#allocation2 + $0x20] sm:$0xff]  ;;  %v52_v28 = vld [vmem:[#allocation2 + $0x28] sm:$0xff]  ;;  %v81_v30 = vld [vmem:[#allocation2 + $0x110] sm:$0xff] }
  0x17   :  { %654 = vmatpush.msra.mxu2 %v122_v4  ;;  %655 = vmatpush.msra.mxu3 %v122_v4  ;;  %v67_v26 = vld [vmem:[#allocation2 + $0xa0] sm:$0xff]  ;;  %v68_v29 = vld [vmem:[#allocation2 + $0xa8] sm:$0xff]  ;;  %v53_v31 = vld [vmem:[#allocation2 + $0x30] sm:$0xff] }
  0x18   :  { %132 = vmatpush.msra.mxu0 %v121_v5  ;;  %656 = vmatpush.msra.mxu1 %v121_v5  ;;  %v69_v32 = vld [vmem:[#allocation2 + $0xb0] sm:$0xff]  ;;  %v82_v33 = vld [vmem:[#allocation2 + $0x118] sm:$0xff]  ;;  %v83_v36 = vld [vmem:[#allocation2 + $0x120] sm:$0xff] }
  0x19   :  { %657 = vmatpush.msra.mxu2 %v121_v5  ;;  %658 = vmatpush.msra.mxu3 %v121_v5  ;;  %v54_v34 = vld [vmem:[#allocation2 + $0x38] sm:$0xff]  ;;  %v95_v37 = vld [vmem:[#allocation2 + $0x180] sm:$0xff]  ;;  %v84_v40 = vld [vmem:[#allocation2 + $0x128] sm:$0xff] }
  0x1a   :  { %133 = vmatpush.msra.mxu0 %v120_v6  ;;  %659 = vmatpush.msra.mxu1 %v120_v6  ;;  %v70_v35 = vld [vmem:[#allocation2 + $0xb8] sm:$0xff]  ;;  %v55_v38 = vld [vmem:[#allocation2 + $0x40] sm:$0xff]  ;;  %v96_v41 = vld [vmem:[#allocation2 + $0x188] sm:$0xff] }
  0x1b   :  { %660 = vmatpush.msra.mxu2 %v120_v6  ;;  %661 = vmatpush.msra.mxu3 %v120_v6  ;;  %v71_v39 = vld [vmem:[#allocation2 + $0xc0] sm:$0xff]  ;;  %v56_v42 = vld [vmem:[#allocation2 + $0x48] sm:$0xff]  ;;  %v85_v44 = vld [vmem:[#allocation2 + $0x130] sm:$0xff] }
  0x1c   :  { %134 = vmatpush.msra.mxu0 %v119_v7  ;;  %662 = vmatpush.msra.mxu1 %v119_v7  ;;  %v72_v43 = vld [vmem:[#allocation2 + $0xc8] sm:$0xff]  ;;  %v97_v45 = vld [vmem:[#allocation2 + $0x190] sm:$0xff]  ;;  %v86_v48 = vld [vmem:[#allocation2 + $0x138] sm:$0xff] }
  0x1d   :  { %663 = vmatpush.msra.mxu2 %v119_v7  ;;  %664 = vmatpush.msra.mxu3 %v119_v7  ;;  %v57_v46 = vld [vmem:[#allocation2 + $0x50] sm:$0xff]  ;;  %v98_v49 = vld [vmem:[#allocation2 + $0x198] sm:$0xff]  ;;  %v87_v52 = vld [vmem:[#allocation2 + $0x140] sm:$0xff] }
  0x1e   :  { %135 = vmatpush.msra.mxu0 %v118_v8  ;;  %665 = vmatpush.msra.mxu1 %v118_v8  ;;  %v73_v47 = vld [vmem:[#allocation2 + $0xd0] sm:$0xff]  ;;  %v58_v50 = vld [vmem:[#allocation2 + $0x58] sm:$0xff]  ;;  %v99_v53 = vld [vmem:[#allocation2 + $0x1a0] sm:$0xff] }
  0x1f   :  { %666 = vmatpush.msra.mxu2 %v118_v8  ;;  %667 = vmatpush.msra.mxu3 %v118_v8  ;;  %v74_v51 = vld [vmem:[#allocation2 + $0xd8] sm:$0xff]  ;;  %v59_v54 = vld [vmem:[#allocation2 + $0x60] sm:$0xff]  ;;  %v88_v56 = vld [vmem:[#allocation2 + $0x148] sm:$0xff] }
  0x20   :  { %136 = vmatpush.msra.mxu0 %v117_v9  ;;  %668 = vmatpush.msra.mxu1 %v117_v9  ;;  %v75_v55 = vld [vmem:[#allocation2 + $0xe0] sm:$0xff]  ;;  %v100_v57 = vld [vmem:[#allocation2 + $0x1a8] sm:$0xff]  ;;  %v89_v60 = vld [vmem:[#allocation2 + $0x150] sm:$0xff] }
  0x21   :  { %669 = vmatpush.msra.mxu2 %v117_v9  ;;  %670 = vmatpush.msra.mxu3 %v117_v9  ;;  %v60_v58 = vld [vmem:[#allocation2 + $0x68] sm:$0xff]  ;;  %v101_v61 = vld [vmem:[#allocation2 + $0x1b0] sm:$0xff]  ;;  %v90_v0 = vld [vmem:[#allocation2 + $0x158] sm:$0xff] }
  0x22   :  { %137 = vmatpush.msra.mxu0 %v116_v10  ;;  %671 = vmatpush.msra.mxu1 %v116_v10  ;;  %v76_v59 = vld [vmem:[#allocation2 + $0xe8] sm:$0xff]  ;;  %v61_v62 = vld [vmem:[#allocation2 + $0x70] sm:$0xff]  ;;  %v102_v1 = vld [vmem:[#allocation2 + $0x1b8] sm:$0xff] }
  0x23   :  { %672 = vmatpush.msra.mxu2 %v116_v10  ;;  %673 = vmatpush.msra.mxu3 %v116_v10  ;;  %v77_v63 = vld [vmem:[#allocation2 + $0xf0] sm:$0xff]  ;;  %v62_v2 = vld [vmem:[#allocation2 + $0x78] sm:$0xff]  ;;  %v91_v4 = vld [vmem:[#allocation2 + $0x160] sm:$0xff] }
  0x24   :  { %138 = vmatpush.msra.mxu0 %v115_v11  ;;  %674 = vmatpush.msra.mxu1 %v115_v11  ;;  %v78_v3 = vld [vmem:[#allocation2 + $0xf8] sm:$0xff]  ;;  %v103_v5 = vld [vmem:[#allocation2 + $0x1c0] sm:$0xff]  ;;  %v92_v8 = vld [vmem:[#allocation2 + $0x168] sm:$0xff] }
  0x25   :  { %675 = vmatpush.msra.mxu2 %v115_v11  ;;  %676 = vmatpush.msra.mxu3 %v115_v11  ;;  %v104_v9 = vld [vmem:[#allocation2 + $0x1c8] sm:$0xff] }
  0x26   :  { %139 = vmatpush.msra.mxu0 %v114_v12  ;;  %677 = vmatpush.msra.mxu1 %v114_v12 }
  0x27   :  { %678 = vmatpush.msra.mxu2 %v114_v12  ;;  %679 = vmatpush.msra.mxu3 %v114_v12 }
  0x28   :  { %140 = vmatpush.msra.mxu0 %v113_v13  ;;  %680 = vmatpush.msra.mxu1 %v113_v13 }
  0x29   :  { %681 = vmatpush.msra.mxu2 %v113_v13  ;;  %682 = vmatpush.msra.mxu3 %v113_v13 }
  0x2a   :  { %141 = vmatpush.msra.mxu0 %v112_v14  ;;  %683 = vmatpush.msra.mxu1 %v112_v14 }
  0x2b   :  { %684 = vmatpush.msra.mxu2 %v112_v14  ;;  %685 = vmatpush.msra.mxu3 %v112_v14 }
  0x2c   :  { %142 = vmatpush.msra.mxu0 %v111_v15  ;;  %686 = vmatpush.msra.mxu1 %v111_v15 }
  0x2d   :  { %143 = vmatmul.f32.vlgmr.msra.gmra.mxu0 %v47_v16  ;;  %191 = vmatmul.f32.vlgmr.msra.gmra.mxu1 %v63_v17  ;;  %v93_v16 = vld [vmem:[#allocation2 + $0x170] sm:$0xff] }
  0x2e   :  { %687 = vmatpush.msra.mxu2 %v111_v15  ;;  %688 = vmatpush.msra.mxu3 %v111_v15  ;;  %v105_v17 = vld [vmem:[#allocation2 + $0x1d0] sm:$0xff] }
  0x2f   :  { %239 = vmatmul.f32.vlgmr.msra.gmra.mxu2 %v79_v24  ;;  %287 = vmatmul.f32.vlgmr.msra.gmra.mxu3 %v95_v37  ;;  %v106_v24 = vld [vmem:[#allocation2 + $0x1d8] sm:$0xff]  ;;  %v108_v37 = vld [vmem:[#allocation2 + $0x1e8] sm:$0xff] }
  0x35   :  { %146 = vmatmul.f32.gmra.mxu0 %v48_v18  ;;  %194 = vmatmul.f32.gmra.mxu1 %v64_v19 }
  0x37   :  { %242 = vmatmul.f32.gmra.mxu2 %v80_v27  ;;  %290 = vmatmul.f32.gmra.mxu3 %v96_v41  ;;  %v109_v41 = vld [vmem:[#allocation2 + $0x1f0] sm:$0xff] }
  0x3d   :  { %149 = vmatmul.f32.gmra.mxu0 %v49_v20  ;;  %197 = vmatmul.f32.gmra.mxu1 %v65_v21 }
  0x3f   :  { %245 = vmatmul.f32.gmra.mxu2 %v81_v30  ;;  %293 = vmatmul.f32.gmra.mxu3 %v97_v45  ;;  %v107_v30 = vld [vmem:[#allocation2 + $0x1e0] sm:$0xff]  ;;  %v110_v45 = vld [vmem:[#allocation2 + $0x1f8] sm:$0xff] }
  0x45   :  { %152 = vmatmul.f32.gmra.mxu0 %v50_v22  ;;  %200 = vmatmul.f32.gmra.mxu1 %v66_v23  ;;  %v94_v23 = vld [vmem:[#allocation2 + $0x178] sm:$0xff] }
  0x47   :  { %248 = vmatmul.f32.gmra.mxu2 %v82_v33  ;;  %296 = vmatmul.f32.gmra.mxu3 %v98_v49 }
  0x4d   :  { %155 = vmatmul.f32.gmra.mxu0 %v51_v25  ;;  %203 = vmatmul.f32.gmra.mxu1 %v67_v26 }
  0x4f   :  { %251 = vmatmul.f32.gmra.mxu2 %v83_v36  ;;  %299 = vmatmul.f32.gmra.mxu3 %v99_v53 }
  0x55   :  { %158 = vmatmul.f32.gmra.mxu0 %v52_v28  ;;  %206 = vmatmul.f32.gmra.mxu1 %v68_v29 }
  0x57   :  { %254 = vmatmul.f32.gmra.mxu2 %v84_v40  ;;  %302 = vmatmul.f32.gmra.mxu3 %v100_v57 }
  0x5d   :  { %161 = vmatmul.f32.gmra.mxu0 %v53_v31  ;;  %209 = vmatmul.f32.gmra.mxu1 %v69_v32 }
  0x5f   :  { %257 = vmatmul.f32.gmra.mxu2 %v85_v44  ;;  %305 = vmatmul.f32.gmra.mxu3 %v101_v61 }
  0x65   :  { %164 = vmatmul.f32.gmra.mxu0 %v54_v34  ;;  %212 = vmatmul.f32.gmra.mxu1 %v70_v35 }
  0x67   :  { %260 = vmatmul.f32.gmra.mxu2 %v86_v48  ;;  %308 = vmatmul.f32.gmra.mxu3 %v102_v1 }
  0x6d   :  { %167 = vmatmul.f32.gmra.mxu0 %v55_v38  ;;  %215 = vmatmul.f32.gmra.mxu1 %v71_v39 }
  0x6f   :  { %263 = vmatmul.f32.gmra.mxu2 %v87_v52  ;;  %311 = vmatmul.f32.gmra.mxu3 %v103_v5 }
  0x75   :  { %170 = vmatmul.f32.gmra.mxu0 %v56_v42  ;;  %218 = vmatmul.f32.gmra.mxu1 %v72_v43 }
  0x77   :  { %266 = vmatmul.f32.gmra.mxu2 %v88_v56  ;;  %314 = vmatmul.f32.gmra.mxu3 %v104_v9 }
  0x7d   :  { %173 = vmatmul.f32.gmra.mxu0 %v57_v46  ;;  %221 = vmatmul.f32.gmra.mxu1 %v73_v47 }
  0x7f   :  { %269 = vmatmul.f32.gmra.mxu2 %v89_v60  ;;  %317 = vmatmul.f32.gmra.mxu3 %v105_v17 }
  0x85   :  { %176 = vmatmul.f32.gmra.mxu0 %v58_v50  ;;  %224 = vmatmul.f32.gmra.mxu1 %v74_v51 }
  0x87   :  { %272 = vmatmul.f32.gmra.mxu2 %v90_v0  ;;  %320 = vmatmul.f32.gmra.mxu3 %v106_v24 }
  0x8d   :  { %179 = vmatmul.f32.gmra.mxu0 %v59_v54  ;;  %227 = vmatmul.f32.gmra.mxu1 %v75_v55 }
  0x8f   :  { %275 = vmatmul.f32.gmra.mxu2 %v91_v4  ;;  %323 = vmatmul.f32.gmra.mxu3 %v107_v30 }
  0x95   :  { %182 = vmatmul.f32.gmra.mxu0 %v60_v58  ;;  %230 = vmatmul.f32.gmra.mxu1 %v76_v59 }
  0x97   :  { %278 = vmatmul.f32.gmra.mxu2 %v92_v8  ;;  %326 = vmatmul.f32.gmra.mxu3 %v108_v37 }
  0x9d   :  { %185 = vmatmul.f32.gmra.mxu0 %v61_v62  ;;  %233 = vmatmul.f32.gmra.mxu1 %v77_v63 }
  0x9f   :  { %281 = vmatmul.f32.gmra.mxu2 %v93_v16  ;;  %329 = vmatmul.f32.gmra.mxu3 %v109_v41 }
  0xa5   :  { %188 = vmatmul.f32.gmra.mxu0 %v62_v2  ;;  %236 = vmatmul.f32.gmra.mxu1 %v78_v3 }
  0xa7   :  { %284 = vmatmul.f32.gmra.mxu2 %v94_v23  ;;  %332 = vmatmul.f32.gmra.mxu3 %v110_v45 }
  0xaa   :  { %v144_v6 = vpop.f32.mrf.mxu0  ;;  %v837_v7 = vpop.f32.mrf.mxu1 }
  0xab   :  { %336 = vst [vmem:[#allocation7] sm:$0xff] %v144_v6  ;;  %v469_v12 = vmul.f32 %v144_v6, %v144_v6 }
  0xac   :  { %352 = vst [vmem:[#allocation7 + $0x80] sm:$0xff] %v837_v7 }
  0xb2   :  { %v147_v10 = vpop.f32.mrf.mxu0  ;;  %v840_v11 = vpop.f32.mrf.mxu1 }
  0xb3   :  { %337 = vst [vmem:[#allocation7 + $0x8] sm:$0xff] %v147_v10  ;;  %v400_v13 = vadd.f32 %v147_v10, %v144_v6  ;;  %v470_v14 = vmul.f32 %v147_v10, %v147_v10  ;;  %v853_v35 = vpop.f32.mrf.mxu2  ;;  %v884_v52 = vpop.f32.mrf.mxu3 }
  0xb4   :  { %353 = vst [vmem:[#allocation7 + $0x88] sm:$0xff] %v840_v11 }
  0xb5   :  { %v533_v15 = vadd.f32 %v470_v14, %v469_v12  ;;  %368 = vst [vmem:[#allocation7 + $0x100] sm:$0xff] %v853_v35 }
  0xb6   :  { %384 = vst [vmem:[#allocation7 + $0x180] sm:$0xff] %v884_v52 }
  0xba   :  { %v150_v18 = vpop.f32.mrf.mxu0  ;;  %v843_v19 = vpop.f32.mrf.mxu1 }
  0xbb   :  { %338 = vst [vmem:[#allocation7 + $0x10] sm:$0xff] %v150_v18  ;;  %v401_v20 = vadd.f32 %v400_v13, %v150_v18  ;;  %v471_v21 = vmul.f32 %v150_v18, %v150_v18  ;;  %v864_v40 = vpop.f32.mrf.mxu2  ;;  %v893_v56 = vpop.f32.mrf.mxu3 }
  0xbc   :  { %354 = vst [vmem:[#allocation7 + $0x90] sm:$0xff] %v843_v19 }
  0xbd   :  { %v534_v22 = vadd.f32 %v533_v15, %v471_v21  ;;  %369 = vst [vmem:[#allocation7 + $0x108] sm:$0xff] %v864_v40 }
  0xbe   :  { %385 = vst [vmem:[#allocation7 + $0x188] sm:$0xff] %v893_v56 }
  0xc2   :  { %v153_v25 = vpop.f32.mrf.mxu0  ;;  %v846_v26 = vpop.f32.mrf.mxu1 }
  0xc3   :  { %339 = vst [vmem:[#allocation7 + $0x18] sm:$0xff] %v153_v25  ;;  %v402_v27 = vadd.f32 %v401_v20, %v153_v25  ;;  %v472_v28 = vmul.f32 %v153_v25, %v153_v25  ;;  %v870_v44 = vpop.f32.mrf.mxu2  ;;  %v902_v60 = vpop.f32.mrf.mxu3 }
  0xc4   :  { %355 = vst [vmem:[#allocation7 + $0x98] sm:$0xff] %v846_v26 }
  0xc5   :  { %v535_v29 = vadd.f32 %v534_v22, %v472_v28  ;;  %370 = vst [vmem:[#allocation7 + $0x110] sm:$0xff] %v870_v44 }
  0xc6   :  { %386 = vst [vmem:[#allocation7 + $0x190] sm:$0xff] %v902_v60 }
  0xca   :  { %v156_v31 = vpop.f32.mrf.mxu0  ;;  %v849_v32 = vpop.f32.mrf.mxu1 }
  0xcb   :  { %340 = vst [vmem:[#allocation7 + $0x20] sm:$0xff] %v156_v31  ;;  %v851_v33 = vadd.f32 %v402_v27, %v156_v31  ;;  %v473_v34 = vmul.f32 %v156_v31, %v156_v31  ;;  %v876_v48 = vpop.f32.mrf.mxu2  ;;  %v911_v0 = vpop.f32.mrf.mxu3 }
  0xcc   :  { %356 = vst [vmem:[#allocation7 + $0xa0] sm:$0xff] %v849_v32 }
  0xcd   :  { %v856_v36 = vadd.f32 %v535_v29, %v473_v34  ;;  %371 = vst [vmem:[#allocation7 + $0x118] sm:$0xff] %v876_v48 }
  0xce   :  { %387 = vst [vmem:[#allocation7 + $0x198] sm:$0xff] %v911_v0 }
  0xd2   :  { %v859_v38 = vpop.f32.mrf.mxu0  ;;  %v861_v39 = vpop.f32.mrf.mxu1 }
  0xd3   :  { %341 = vst [vmem:[#allocation7 + $0x28] sm:$0xff] %v859_v38  ;;  %v882_v51 = vpop.f32.mrf.mxu2  ;;  %v920_v4 = vpop.f32.mrf.mxu3  ;;  %v474_v5 = vmul.f32 %v859_v38, %v859_v38  ;;  %v404_v6 = vadd.f32 %v851_v33, %v859_v38 }
  0xd4   :  { %357 = vst [vmem:[#allocation7 + $0xa8] sm:$0xff] %v861_v39 }
  0xd5   :  { %372 = vst [vmem:[#allocation7 + $0x120] sm:$0xff] %v882_v51  ;;  %v537_v9 = vadd.f32 %v856_v36, %v474_v5 }
  0xd6   :  { %388 = vst [vmem:[#allocation7 + $0x1a0] sm:$0xff] %v920_v4 }
  0xda   :  { %v162_v42 = vpop.f32.mrf.mxu0  ;;  %v868_v43 = vpop.f32.mrf.mxu1 }
  0xdb   :  { %342 = vst [vmem:[#allocation7 + $0x30] sm:$0xff] %v162_v42  ;;  %v891_v55 = vpop.f32.mrf.mxu2  ;;  %v475_v8 = vmul.f32 %v162_v42, %v162_v42  ;;  %v405_v10 = vadd.f32 %v404_v6, %v162_v42  ;;  %v934_v20 = vpop.f32.mrf.mxu3 }
  0xdc   :  { %358 = vst [vmem:[#allocation7 + $0xb0] sm:$0xff] %v868_v43 }
  0xdd   :  { %373 = vst [vmem:[#allocation7 + $0x128] sm:$0xff] %v891_v55  ;;  %v538_v15 = vadd.f32 %v537_v9, %v475_v8 }
  0xde   :  { %389 = vst [vmem:[#allocation7 + $0x1a8] sm:$0xff] %v934_v20 }
  0xe2   :  { %v165_v46 = vpop.f32.mrf.mxu0  ;;  %v874_v47 = vpop.f32.mrf.mxu1 }
  0xe3   :  { %343 = vst [vmem:[#allocation7 + $0x38] sm:$0xff] %v165_v46  ;;  %v900_v59 = vpop.f32.mrf.mxu2  ;;  %v476_v12 = vmul.f32 %v165_v46, %v165_v46  ;;  %v406_v16 = vadd.f32 %v405_v10, %v165_v46  ;;  %v943_v41 = vpop.f32.mrf.mxu3 }
  0xe4   :  { %359 = vst [vmem:[#allocation7 + $0xb8] sm:$0xff] %v874_v47 }
  0xe5   :  { %374 = vst [vmem:[#allocation7 + $0x130] sm:$0xff] %v900_v59  ;;  %v539_v21 = vadd.f32 %v538_v15, %v476_v12 }
  0xe6   :  { %390 = vst [vmem:[#allocation7 + $0x1b0] sm:$0xff] %v943_v41 }
  0xea   :  { %v168_v49 = vpop.f32.mrf.mxu0  ;;  %v880_v50 = vpop.f32.mrf.mxu1 }
  0xeb   :  { %344 = vst [vmem:[#allocation7 + $0x40] sm:$0xff] %v168_v49  ;;  %v909_v63 = vpop.f32.mrf.mxu2  ;;  %v477_v17 = vmul.f32 %v168_v49, %v168_v49  ;;  %v407_v22 = vadd.f32 %v406_v16, %v168_v49  ;;  %v485_v16 = vmul.f32 %v837_v7, %v837_v7 }
  0xec   :  { %360 = vst [vmem:[#allocation7 + $0xc0] sm:$0xff] %v880_v50 }
  0xed   :  { %375 = vst [vmem:[#allocation7 + $0x138] sm:$0xff] %v909_v63  ;;  %v540_v24 = vadd.f32 %v539_v21, %v477_v17  ;;  %v486_v21 = vmul.f32 %v840_v11, %v840_v11 }
  0xf2   :  { %v171_v53 = vpop.f32.mrf.mxu0  ;;  %v889_v54 = vpop.f32.mrf.mxu1 }
  0xf3   :  { %345 = vst [vmem:[#allocation7 + $0x48] sm:$0xff] %v171_v53  ;;  %v918_v3 = vpop.f32.mrf.mxu2  ;;  %v478_v23 = vmul.f32 %v171_v53, %v171_v53  ;;  %v408_v25 = vadd.f32 %v407_v22, %v171_v53 }
  0xf4   :  { %361 = vst [vmem:[#allocation7 + $0xc8] sm:$0xff] %v889_v54 }
  0xf5   :  { %376 = vst [vmem:[#allocation7 + $0x140] sm:$0xff] %v918_v3  ;;  %v541_v28 = vadd.f32 %v540_v24, %v478_v23  ;;  %v487_v24 = vmul.f32 %v843_v19, %v843_v19 }
  0xfa   :  { %v174_v57 = vpop.f32.mrf.mxu0  ;;  %v898_v58 = vpop.f32.mrf.mxu1 }
  0xfb   :  { %346 = vst [vmem:[#allocation7 + $0x50] sm:$0xff] %v174_v57  ;;  %v932_v18 = vpop.f32.mrf.mxu2  ;;  %v479_v27 = vmul.f32 %v174_v57, %v174_v57  ;;  %v409_v29 = vadd.f32 %v408_v25, %v174_v57 }
  0xfc   :  { %362 = vst [vmem:[#allocation7 + $0xd0] sm:$0xff] %v898_v58 }
  0xfd   :  { %377 = vst [vmem:[#allocation7 + $0x148] sm:$0xff] %v932_v18  ;;  %v542_v34 = vadd.f32 %v541_v28, %v479_v27 }
 0x102   :  { %v177_v61 = vpop.f32.mrf.mxu0  ;;  %v907_v62 = vpop.f32.mrf.mxu1 }
 0x103   :  { %347 = vst [vmem:[#allocation7 + $0x58] sm:$0xff] %v177_v61  ;;  %v480_v30 = vmul.f32 %v177_v61, %v177_v61  ;;  %v410_v36 = vadd.f32 %v409_v29, %v177_v61  ;;  %v941_v38 = vpop.f32.mrf.mxu2 }
 0x104   :  { %363 = vst [vmem:[#allocation7 + $0xd8] sm:$0xff] %v907_v62 }
 0x105   :  { %v543_v42 = vadd.f32 %v542_v34, %v480_v30  ;;  %378 = vst [vmem:[#allocation7 + $0x150] sm:$0xff] %v941_v38 }
 0x10a   :  { %v180_v1 = vpop.f32.mrf.mxu0  ;;  %v916_v2 = vpop.f32.mrf.mxu1 }
 0x10b   :  { %348 = vst [vmem:[#allocation7 + $0x60] sm:$0xff] %v180_v1  ;;  %v481_v37 = vmul.f32 %v180_v1, %v180_v1  ;;  %v411_v45 = vadd.f32 %v410_v36, %v180_v1  ;;  %v950_v15 = vpop.f32.mrf.mxu2  ;;  %v952_v1 = vpop.f32.mrf.mxu3 }
 0x10c   :  { %364 = vst [vmem:[#allocation7 + $0xe0] sm:$0xff] %v916_v2 }
 0x10d   :  { %v544_v49 = vadd.f32 %v543_v42, %v481_v37  ;;  %379 = vst [vmem:[#allocation7 + $0x158] sm:$0xff] %v950_v15  ;;  %v491_v42 = vmul.f32 %v868_v43, %v868_v43 }
 0x10e   :  { %391 = vst [vmem:[#allocation7 + $0x1b8] sm:$0xff] %v952_v1 }
 0x112   :  { %v183_v13 = vpop.f32.mrf.mxu0  ;;  %v930_v14 = vpop.f32.mrf.mxu1 }
 0x113   :  { %349 = vst [vmem:[#allocation7 + $0x68] sm:$0xff] %v183_v13  ;;  %v482_v46 = vmul.f32 %v183_v13, %v183_v13  ;;  %v412_v53 = vadd.f32 %v411_v45, %v183_v13  ;;  %v969_v30 = vpop.f32.mrf.mxu2 }
 0x114   :  { %365 = vst [vmem:[#allocation7 + $0xe8] sm:$0xff] %v930_v14 }
 0x115   :  { %v545_v5 = vadd.f32 %v544_v49, %v482_v46  ;;  %380 = vst [vmem:[#allocation7 + $0x160] sm:$0xff] %v969_v30  ;;  %v492_v49 = vmul.f32 %v874_v47, %v874_v47 }
 0x11a   :  { %v186_v31 = vpop.f32.mrf.mxu0  ;;  %v939_v33 = vpop.f32.mrf.mxu1 }
 0x11b   :  { %350 = vst [vmem:[#allocation7 + $0x70] sm:$0xff] %v186_v31  ;;  %v483_v57 = vmul.f32 %v186_v31, %v186_v31  ;;  %v413_v61 = vadd.f32 %v412_v53, %v186_v31  ;;  %v971_v31 = vpop.f32.mrf.mxu3 }
 0x11c   :  { %366 = vst [vmem:[#allocation7 + $0xf0] sm:$0xff] %v939_v33 }
 0x11d   :  { %v546_v9 = vadd.f32 %v545_v5, %v483_v57  ;;  %392 = vst [vmem:[#allocation7 + $0x1c0] sm:$0xff] %v971_v31  ;;  %v987_v57 = vpop.f32.mrf.mxu2 }
 0x11e   :  { %381 = vst [vmem:[#allocation7 + $0x168] sm:$0xff] %v987_v57 }
 0x122   :  { %v189_v6 = vpop.f32.mrf.mxu0  ;;  %v948_v8 = vpop.f32.mrf.mxu1 }
 0x123   :  { %351 = vst [vmem:[#allocation7 + $0x78] sm:$0xff] %v189_v6  ;;  %v414_v10 = vadd.f32 %v413_v61, %v189_v6  ;;  %v484_v12 = vmul.f32 %v189_v6, %v189_v6  ;;  %v989_v5 = vpop.f32.mrf.mxu3 }
 0x124   :  { %367 = vst [vmem:[#allocation7 + $0xf8] sm:$0xff] %v948_v8 }
 0x125   :  { %v415_v13 = vadd.f32 %v414_v10, %v837_v7  ;;  %v547_v17 = vadd.f32 %v546_v9, %v484_v12  ;;  %v488_v7 = vmul.f32 %v846_v26, %v846_v26  ;;  %393 = vst [vmem:[#allocation7 + $0x1c8] sm:$0xff] %v989_v5  ;;  %v495_v10 = vmul.f32 %v898_v58, %v898_v58 }
 0x127   :  { %v416_v22 = vadd.f32 %v415_v13, %v840_v11  ;;  %v548_v23 = vadd.f32 %v547_v17, %v485_v16  ;;  %v489_v11 = vmul.f32 %v849_v32, %v849_v32 }
 0x129   :  { %v417_v25 = vadd.f32 %v416_v22, %v843_v19  ;;  %v549_v27 = vadd.f32 %v548_v23, %v486_v21  ;;  %v490_v19 = vmul.f32 %v861_v39, %v861_v39  ;;  %v1005_v21 = vpop.f32.mrf.mxu2 }
 0x12a   :  { %382 = vst [vmem:[#allocation7 + $0x170] sm:$0xff] %v1005_v21 }
 0x12b   :  { %v418_v28 = vadd.f32 %v417_v25, %v846_v26  ;;  %v550_v29 = vadd.f32 %v549_v27, %v487_v24  ;;  %v1007_v22 = vpop.f32.mrf.mxu3  ;;  %v497_v24 = vmul.f32 %v916_v2, %v916_v2 }
 0x12c   :  { %394 = vst [vmem:[#allocation7 + $0x1d0] sm:$0xff] %v1007_v22 }
 0x12d   :  { %v419_v34 = vadd.f32 %v418_v28, %v849_v32  ;;  %v551_v36 = vadd.f32 %v550_v29, %v488_v7  ;;  %v499_v28 = vmul.f32 %v939_v33, %v939_v33  ;;  %v500_v29 = vmul.f32 %v948_v8, %v948_v8 }
 0x12f   :  { %v420_v26 = vadd.f32 %v419_v34, %v861_v39  ;;  %v552_v37 = vadd.f32 %v551_v36, %v489_v11  ;;  %v493_v39 = vmul.f32 %v880_v50, %v880_v50 }
 0x131   :  { %v553_v45 = vadd.f32 %v552_v37, %v490_v19  ;;  %v421_v46 = vadd.f32 %v420_v26, %v868_v43  ;;  %v494_v43 = vmul.f32 %v889_v54, %v889_v54  ;;  %v285_v34 = vpop.f32.mrf.mxu2  ;;  %v501_v19 = vmul.f32 %v853_v35, %v853_v35 }
 0x132   :  { %383 = vst [vmem:[#allocation7 + $0x178] sm:$0xff] %v285_v34 }
 0x133   :  { %v422_v32 = vadd.f32 %v421_v46, %v874_v47  ;;  %v554_v53 = vadd.f32 %v553_v45, %v491_v42  ;;  %v1023_v36 = vpop.f32.mrf.mxu3 }
 0x134   :  { %395 = vst [vmem:[#allocation7 + $0x1d8] sm:$0xff] %v1023_v36 }
 0x135   :  { %v423_v61 = vadd.f32 %v422_v32, %v880_v50  ;;  %v555_v6 = vadd.f32 %v554_v53, %v492_v49  ;;  %v496_v50 = vmul.f32 %v907_v62, %v907_v62  ;;  %v504_v49 = vmul.f32 %v876_v48, %v876_v48 }
 0x137   :  { %v424_v47 = vadd.f32 %v423_v61, %v889_v54  ;;  %v556_v9 = vadd.f32 %v555_v6, %v493_v39 }
 0x139   :  { %v425_v12 = vadd.f32 %v424_v47, %v898_v58  ;;  %v557_v16 = vadd.f32 %v556_v9, %v494_v43 }
 0x13b   :  { %v426_v13 = vadd.f32 %v425_v12, %v907_v62  ;;  %v558_v17 = vadd.f32 %v557_v16, %v495_v10  ;;  %v498_v62 = vmul.f32 %v930_v14, %v930_v14  ;;  %v1038_v53 = vpop.f32.mrf.mxu3  ;;  %v508_v10 = vmul.f32 %v909_v63, %v909_v63 }
 0x13c   :  { %396 = vst [vmem:[#allocation7 + $0x1e0] sm:$0xff] %v1038_v53 }
 0x13d   :  { %v559_v54 = vadd.f32 %v558_v17, %v496_v50  ;;  %v427_v23 = vadd.f32 %v426_v13, %v916_v2  ;;  %v510_v17 = vmul.f32 %v932_v18, %v932_v18 }
 0x13f   :  { %v560_v58 = vadd.f32 %v559_v54, %v497_v24  ;;  %v428_v25 = vadd.f32 %v427_v23, %v930_v14 }
 0x141   :  { %v561_v27 = vadd.f32 %v560_v58, %v498_v62  ;;  %v429_v7 = vadd.f32 %v428_v25, %v939_v33  ;;  %v502_v33 = vmul.f32 %v864_v40, %v864_v40  ;;  %v512_v25 = vmul.f32 %v950_v15, %v950_v15 }
 0x143   :  { %v562_v11 = vadd.f32 %v561_v27, %v499_v28  ;;  %v430_v2 = vadd.f32 %v429_v7, %v948_v8  ;;  %v503_v8 = vmul.f32 %v870_v44, %v870_v44  ;;  %v513_v7 = vmul.f32 %v969_v30, %v969_v30 }
 0x145   :  { %v431_v14 = vadd.f32 %v430_v2, %v853_v35  ;;  %v563_v26 = vadd.f32 %v562_v11, %v500_v29  ;;  %v514_v29 = vmul.f32 %v987_v57, %v987_v57  ;;  %v515_v2 = vmul.f32 %v1005_v21, %v1005_v21 }
 0x147   :  { %v432_v37 = vadd.f32 %v431_v14, %v864_v40  ;;  %v564_v42 = vadd.f32 %v563_v26, %v501_v19  ;;  %v505_v40 = vmul.f32 %v882_v51, %v882_v51  ;;  %v516_v19 = vmul.f32 %v285_v34, %v285_v34 }
 0x149   :  { %v433_v45 = vadd.f32 %v432_v37, %v870_v44  ;;  %v565_v46 = vadd.f32 %v564_v42, %v502_v33  ;;  %v506_v44 = vmul.f32 %v891_v55, %v891_v55 }
 0x14b   :  { %v434_v35 = vadd.f32 %v433_v45, %v876_v48  ;;  %v566_v32 = vadd.f32 %v565_v46, %v503_v8  ;;  %v507_v48 = vmul.f32 %v900_v59, %v900_v59 }
 0x14d   :  { %v435_v39 = vadd.f32 %v434_v35, %v882_v51  ;;  %v567_v61 = vadd.f32 %v566_v32, %v504_v49  ;;  %v1053_v51 = vpop.f32.mrf.mxu3  ;;  %v521_v32 = vmul.f32 %v920_v4, %v920_v4 }
 0x14e   :  { %397 = vst [vmem:[#allocation7 + $0x1e8] sm:$0xff] %v1053_v51 }
 0x14f   :  { %v436_v6 = vadd.f32 %v435_v39, %v891_v55  ;;  %v568_v43 = vadd.f32 %v567_v61, %v505_v40  ;;  %v509_v55 = vmul.f32 %v918_v3, %v918_v3 }
 0x151   :  { %v569_v47 = vadd.f32 %v568_v43, %v506_v44  ;;  %v437_v9 = vadd.f32 %v436_v6, %v900_v59 }
 0x153   :  { %v438_v12 = vadd.f32 %v437_v9, %v909_v63  ;;  %v570_v16 = vadd.f32 %v569_v47, %v507_v48  ;;  %v511_v63 = vmul.f32 %v941_v38, %v941_v38 }
 0x155   :  { %v439_v13 = vadd.f32 %v438_v12, %v918_v3  ;;  %v571_v50 = vadd.f32 %v570_v16, %v508_v10  ;;  %v1068_v3 = vpop.f32.mrf.mxu3 }
 0x156   :  { %398 = vst [vmem:[#allocation7 + $0x1f0] sm:$0xff] %v1068_v3 }
 0x157   :  { %v440_v59 = vadd.f32 %v439_v13, %v932_v18  ;;  %v572_v54 = vadd.f32 %v571_v50, %v509_v55  ;;  %v528_v50 = vmul.f32 %v1023_v36, %v1023_v36 }
 0x159   :  { %v441_v23 = vadd.f32 %v440_v59, %v941_v38  ;;  %v573_v24 = vadd.f32 %v572_v54, %v510_v17  ;;  %v529_v54 = vmul.f32 %v1038_v53, %v1038_v53 }
 0x15b   :  { %v442_v58 = vadd.f32 %v441_v23, %v950_v15  ;;  %v574_v62 = vadd.f32 %v573_v24, %v511_v63  ;;  %v530_v23 = vmul.f32 %v1053_v51, %v1053_v51 }
 0x15d   :  { %v575_v27 = vadd.f32 %v574_v62, %v512_v25  ;;  %v443_v18 = vadd.f32 %v442_v58, %v969_v30  ;;  %v333_v26 = vpop.f32.mrf.mxu3  ;;  %v531_v58 = vmul.f32 %v1068_v3, %v1068_v3 }
 0x15e   :  { %399 = vst [vmem:[#allocation7 + $0x1f8] sm:$0xff] %v333_v26 }
 0x15f   :  { %v576_v28 = vadd.f32 %v575_v27, %v513_v7  ;;  %v444_v38 = vadd.f32 %v443_v18, %v987_v57  ;;  %v517_v57 = vmul.f32 %v884_v52, %v884_v52  ;;  %617 = dma.vmem_to_hbm [thread:$0]  %s610_s1, 8192, %s612_s26, [#allocation4], %s800_s20, %s800_s20, %s801_s21  }
 0x161   :  { %v577_v15 = vadd.f32 %v576_v28, %v514_v29  ;;  %v445_v11 = vadd.f32 %v444_v38, %v1005_v21  ;;  %v518_v21 = vmul.f32 %v893_v56, %v893_v56 }
 0x163   :  { %v578_v30 = vadd.f32 %v577_v15, %v515_v2  ;;  %v446_v14 = vadd.f32 %v445_v11, %v285_v34  ;;  %v519_v34 = vmul.f32 %v902_v60, %v902_v60 }
 0x165   :  { %v447_v33 = vadd.f32 %v446_v14, %v884_v52  ;;  %v579_v37 = vadd.f32 %v578_v30, %v516_v19  ;;  %v520_v52 = vmul.f32 %v911_v0, %v911_v0 }
 0x167   :  { %v448_v42 = vadd.f32 %v447_v33, %v893_v56  ;;  %v580_v8 = vadd.f32 %v579_v37, %v517_v57  ;;  %v522_v56 = vmul.f32 %v934_v20, %v934_v20 }
 0x169   :  { %v449_v45 = vadd.f32 %v448_v42, %v902_v60  ;;  %v581_v46 = vadd.f32 %v580_v8, %v518_v21  ;;  %v523_v60 = vmul.f32 %v943_v41, %v943_v41 }
 0x16b   :  { %v450_v49 = vadd.f32 %v449_v45, %v911_v0  ;;  %v582_v35 = vadd.f32 %v581_v46, %v519_v34  ;;  %v524_v0 = vmul.f32 %v952_v1, %v952_v1 }
 0x16d   :  { %v451_v40 = vadd.f32 %v450_v49, %v920_v4  ;;  %v583_v39 = vadd.f32 %v582_v35, %v520_v52  ;;  %v525_v4 = vmul.f32 %v971_v31, %v971_v31 }
 0x16f   :  { %v452_v61 = vadd.f32 %v451_v40, %v934_v20  ;;  %v584_v44 = vadd.f32 %v583_v39, %v521_v32  ;;  %v526_v20 = vmul.f32 %v989_v5, %v989_v5 }
 0x171   :  { %v585_v6 = vadd.f32 %v584_v44, %v522_v56  ;;  %v453_v43 = vadd.f32 %v452_v61, %v943_v41  ;;  %v527_v41 = vmul.f32 %v1007_v22, %v1007_v22 }
 0x173   :  { %v454_v48 = vadd.f32 %v453_v43, %v952_v1  ;;  %v586_v47 = vadd.f32 %v585_v6, %v523_v60 }
 0x175   :  { %v455_v9 = vadd.f32 %v454_v48, %v971_v31  ;;  %v587_v10 = vadd.f32 %v586_v47, %v524_v0 }
 0x177   :  { %v456_v12 = vadd.f32 %v455_v9, %v989_v5  ;;  %v588_v16 = vadd.f32 %v587_v10, %v525_v4 }
 0x179   :  { %v457_v55 = vadd.f32 %v456_v12, %v1007_v22  ;;  %v589_v13 = vadd.f32 %v588_v16, %v526_v20 }
 0x17b   :  { %v458_v1 = vadd.f32 %v457_v55, %v1023_v36  ;;  %v590_v17 = vadd.f32 %v589_v13, %v527_v41  ;;  %v532_v36 = vmul.f32 %v333_v26, %v333_v26 }
 0x17d   :  { %v591_v31 = vadd.f32 %v590_v17, %v528_v50  ;;  %v459_v59 = vadd.f32 %v458_v1, %v1038_v53 }
 0x17f   :  { %v592_v5 = vadd.f32 %v591_v31, %v529_v54  ;;  %v460_v63 = vadd.f32 %v459_v59, %v1053_v51 }
 0x181   :  { %v593_v22 = vadd.f32 %v592_v5, %v530_v23  ;;  %v461_v24 = vadd.f32 %v460_v63, %v1068_v3 }
 0x183   :  { %v594_v25 = vadd.f32 %v593_v22, %v531_v58  ;;  %v462_v62 = vadd.f32 %v461_v24, %v333_v26 }
 0x185   :  { %v463_v27 = vrot.slane %v462_v62, 4  ;;  %v595_v18 = vadd.f32 %v594_v25, %v532_v36 }
 0x187   :  { %v464_v7 = vadd.f32 %v463_v27, %v462_v62  ;;  %v596_v28 = vrot.slane %v595_v18, 4 }
 0x189   :  { %v465_v53 = vrot.slane %v464_v7, 2  ;;  %v597_v38 = vadd.f32 %v596_v28, %v595_v18 }
 0x18b   :  { %v466_v29 = vadd.f32 %v465_v53, %v464_v7  ;;  %v598_v15 = vrot.slane %v597_v38, 2 }
 0x18d   :  { %v467_v11 = vrot.slane %v466_v29, 1  ;;  %v599_v2 = vadd.f32 %v598_v15, %v597_v38 }
 0x18f   :  { %v600_v51 = vrot.slane %v599_v2, 1  ;;  %v468_v3 = vadd.f32 %v467_v11, %v466_v29 }
 0x191   :  { %v601_v19 = vadd.f32 %v600_v51, %v599_v2 }
 0x193   :  { %v603_v30 = vsel %vm602_vm0, %v468_v3, %v601_v19 }
 0x194   :  { %604 = vst [vmem:[#allocation8] sm:$0x3] %v603_v30 }
 0x195   :  { %628 = dma.vmem_to_hbm [thread:$0]  %s624_s27, 32, %s626_s30, [#allocation9]  }
 0x196   :  { %795 = dma.done.wait [#allocation4], 8192  }
 0x197   :  { %796 = vsyncadd [#allocation4], 4294959104 }
 0x198   :  { %797 = dma.done.wait [#allocation9], 32  }
 0x199   :  { %798 = vsyncadd [#allocation9], 4294967264 }
 0x19a   :  { %637 = vsyncpa [#allocation3], 1 }
 0x19b   :  { %638 = vsyncpa [#allocation6], 1 }
 0x19c   :  { %639 = vsyncpa [#allocation4], 1 }
 0x19d   :  { %640 = vsyncpa [#allocation9], 1 }

</bundles_post_ra>
